<compile_context>
chip_gen: v7x
topology: tpu7x:2x2x1
jax: 0.10.0
libtpu: 0.0.40
codegen_flags: <defaults>
</compile_context>

<pallas_src>
import functools

import jax
import jax.numpy as jnp
import numpy as np
from jax import lax
from jax.experimental import pallas as pl
from jax.experimental.pallas import tpu as pltpu


# ------------------------------- opt -----------------------------------------
class Opt:
    mse_loss = False
    dense_hp = False
    reg_loss = 'l1'
    hm_weight = 1.0
    wh_weight = 0.1
    off_weight = 1.0
    hp_weight = 1.0
    hm_hp_weight = 1.0
    reg_offset = True
    reg_hp_offset = True
    hm_hp = True


_VMEM = pl.BlockSpec(memory_space=pltpu.MemorySpace.VMEM)
_SMEM = pl.BlockSpec(memory_space=pltpu.MemorySpace.SMEM)

_LANES = 128
_MAX_TILE_ROWS = 512          # 512*128*4B = 256 KiB per buffer -> tiny VMEM use


def _round_up(x, m):
    return (x + m - 1) // m * m


# --------------------------- Pallas kernels ----------------------------------
def _focal_kernel(logit_ref, gt_ref, out_ref, np_acc, ps_acc, ns_acc, *,
                  bounds):
    """Fused CenterNet focal loss over `len(bounds)` concatenated heatmaps.

    Inputs are lane-dense (tile_rows, 128) blocks of the flattened heatmaps.
    `bounds[s] = (first_tile, last_tile_excl)` (static python ints) gives the
    tile range of segment s.  Padding uses gt == 2.0 so it contributes to
    neither the pos nor the neg branch.
    """
    i = pl.program_id(0)
    nseg = len(bounds)

    @pl.when(i == 0)
    def _init():
        np_acc[...] = jnp.zeros_like(np_acc)
        ps_acc[...] = jnp.zeros_like(ps_acc)
        ns_acc[...] = jnp.zeros_like(ns_acc)

    x = logit_ref[...].astype(jnp.float32)
    gt = gt_ref[...].astype(jnp.float32)

    # _sigmoid: clamp(sigmoid(x), 1e-4, 1 - 1e-4)
    pred = jnp.clip(jax.nn.sigmoid(x), 1e-4, 1.0 - 1e-4)
    pos = gt == 1.0
    pos_f = pos.astype(jnp.float32)
    neg_f = (gt < 1.0).astype(jnp.float32)

    # pos / neg are mutually exclusive -> one EUP log per element.
    logv = jnp.log(jnp.where(pos, pred, 1.0 - pred))
    one_m = 1.0 - pred
    pos_loss = logv * one_m * one_m * pos_f
    neg_gt = 1.0 - gt
    neg_w = neg_gt * neg_gt
    neg_w = neg_w * neg_w                      # (1 - gt)^4
    neg_loss = logv * pred * pred * neg_w * neg_f

    # Partial sums per lane (keeps everything vectorized; final cross-lane
    # reduce happens only once, at the last grid step).
    np_vec = jnp.sum(pos_f, axis=0)            # (128,)
    ps_vec = jnp.sum(pos_loss, axis=0)
    ns_vec = jnp.sum(neg_loss, axis=0)

    # Which segment does this tile belong to?  (static tile boundaries)
    seg_idx = jnp.int32(0)
    for s in range(1, nseg):
        seg_idx = jnp.where(i >= bounds[s][0], jnp.int32(s), seg_idx)
    row = lax.broadcasted_iota(jnp.int32, (nseg, _LANES), 0)
    sel = (row == seg_idx).astype(jnp.float32)     # one-hot over segment rows

    np_acc[...] = np_acc[...] + sel * np_vec
    ps_acc[...] = ps_acc[...] + sel * ps_vec
    ns_acc[...] = ns_acc[...] + sel * ns_vec

    @pl.when(i == pl.num_programs(0) - 1)
    def _finalize():
        for s in range(nseg):
            num_pos = jnp.sum(np_acc[s, :])
            pos_s = jnp.sum(ps_acc[s, :])
            neg_s = jnp.sum(ns_acc[s, :])
            out_ref[0, s] = jnp.where(num_pos == 0.0, -neg_s,
                                      -(pos_s + neg_s) / num_pos)


def _reg_kernel(pred_ref, mask_ref, tgt_ref, seg_ref, out_ref, *, nloss):
    """Fused masked-L1 for all regression heads.

    pred/mask/tgt: lane-dense f32 (R, 128); seg: int32 segment id per element
    (padding uses seg == nloss so it is ignored everywhere).
    """
    pred = pred_ref[...]
    mask = mask_ref[...]
    tgt = tgt_ref[...]
    seg = seg_ref[...]
    d = jnp.abs(pred * mask - tgt * mask)
    for s in range(nloss):                      # static, small (<= 4)
        sel = seg == s
        l1 = jnp.sum(jnp.where(sel, d, 0.0))
        ms = jnp.sum(jnp.where(sel, mask, 0.0))
        out_ref[0, s] = l1 / (ms + 1e-4)


# ------------------------------ wrappers --------------------------------------
def fused_focal_loss(pairs):
    """pairs: list of (logits, gt) heatmaps (any shape). Returns list of scalars."""
    nseg = len(pairs)
    # Keep bf16 inputs bf16 across HBM->VMEM (halves bytes read); else f32.
    if all(l.dtype == jnp.bfloat16 and g.dtype == jnp.bfloat16 for l, g in pairs):
        io_dtype = jnp.bfloat16
    else:
        io_dtype = jnp.float32

    sizes = [int(np.prod(l.shape)) for l, _ in pairs]
    rows_each = [pl.cdiv(n, _LANES) for n in sizes]
    tile_rows = min(_MAX_TILE_ROWS, _round_up(max(rows_each), 16))
    tile_elems = tile_rows * _LANES

    flat_l, flat_g, bounds = [], [], []
    tile_off = 0
    for (logit, gt), n in zip(pairs, sizes):
        n_pad = _round_up(n, tile_elems)
        lf = jnp.pad(jnp.ravel(logit).astype(io_dtype), (0, n_pad - n))
        # gt padding = 2.0  ->  neither pos (gt==1) nor neg (gt<1): contributes 0.
        gf = jnp.pad(jnp.ravel(gt).astype(io_dtype), (0, n_pad - n),
                     constant_values=2.0)
        flat_l.append(lf)
        flat_g.append(gf)
        ntiles = n_pad // tile_elems
        bounds.append((tile_off, tile_off + ntiles))
        tile_off += ntiles
    num_tiles = tile_off

    l_all = jnp.concatenate(flat_l).reshape(num_tiles * tile_rows, _LANES)
    g_all = jnp.concatenate(flat_g).reshape(num_tiles * tile_rows, _LANES)

    kernel = functools.partial(_focal_kernel, bounds=tuple(bounds))
    out = pl.pallas_call(
        kernel,
        out_shape=jax.ShapeDtypeStruct((1, nseg), jnp.float32),
        grid=(num_tiles,),
        in_specs=[pl.BlockSpec((tile_rows, _LANES), lambda i: (i, 0)),
                  pl.BlockSpec((tile_rows, _LANES), lambda i: (i, 0))],
        out_specs=pl.BlockSpec((1, nseg), lambda i: (0, 0),
                               memory_space=pltpu.MemorySpace.SMEM),
        scratch_shapes=[pltpu.VMEM((nseg, _LANES), jnp.float32)] * 3,
        compiler_params=pltpu.CompilerParams(
            dimension_semantics=("arbitrary",)),
        # TODO(synk): v7x megacore split (per-core partial sums on a leading
        # "parallel" axis, reduced in the wrapper) not implemented.
    )(l_all, g_all)
    return [out[0, s] for s in range(nseg)]


def _gather_feat(output_nchw, ind):
    """_transpose_and_gather_feat: (B,C,H,W) + (B,K) -> (B,K,C).

    Done in XLA on the flattened (B,C,HW) map (free reshape, no full NHWC
    transpose); the gathered result is tiny.
    """
    B, C, H, W = output_nchw.shape
    feat = output_nchw.reshape(B, C, H * W).astype(jnp.float32)
    idx = jnp.broadcast_to(ind[:, None, :].astype(jnp.int32),
                           (B, C, ind.shape[1]))
    g = jnp.take_along_axis(feat, idx, axis=2)     # (B, C, K)
    return jnp.transpose(g, (0, 2, 1))             # (B, K, C)


def fused_reg_l1_loss(entries):
    """entries: list of (pred_bkc, mask_bkc, target_bkc). One pallas_call."""
    nloss = len(entries)
    preds, masks, tgts, segs = [], [], [], []
    for s, (p, m, t) in enumerate(entries):
        pf = jnp.ravel(p).astype(jnp.float32)
        preds.append(pf)
        masks.append(jnp.ravel(m).astype(jnp.float32))
        tgts.append(jnp.ravel(t).astype(jnp.float32))
        segs.append(jnp.full((pf.size,), s, jnp.int32))

    pred_all = jnp.concatenate(preds)
    mask_all = jnp.concatenate(masks)
    tgt_all = jnp.concatenate(tgts)
    seg_all = jnp.concatenate(segs)

    n = pred_all.size
    n_pad = _round_up(n, 8 * _LANES)
    pad = n_pad - n
    pred_all = jnp.pad(pred_all, (0, pad))
    mask_all = jnp.pad(mask_all, (0, pad))
    tgt_all = jnp.pad(tgt_all, (0, pad))
    seg_all = jnp.pad(seg_all, (0, pad), constant_values=nloss)  # ignored seg

    shape2d = (n_pad // _LANES, _LANES)
    kernel = functools.partial(_reg_kernel, nloss=nloss)
    out = pl.pallas_call(
        kernel,
        out_shape=jax.ShapeDtypeStruct((1, nloss), jnp.float32),
        in_specs=[_VMEM, _VMEM, _VMEM, _VMEM],
        out_specs=_SMEM,
    )(pred_all.reshape(shape2d), mask_all.reshape(shape2d),
      tgt_all.reshape(shape2d), seg_all.reshape(shape2d))
    return [out[0, s] for s in range(nloss)]


class LossMultiPose:
    """JAX/Pallas mirror of torch `loss_multi_pose` (no learnable params)."""

    def __init__(self, opt):
        self.opt = opt

    def __call__(self, outputs, batch):
        opt = self.opt
        output = outputs[0]

        # ------------------ fused focal losses (1 launch) -------------------
        focal_pairs = [(output['hm'], batch['hm'])]
        hmhp_focal = opt.hm_hp and opt.hm_hp_weight > 0 and not opt.mse_loss
        if hmhp_focal:
            focal_pairs.append((output['hm_hp'], batch['hm_hp']))
        focal_vals = fused_focal_loss(focal_pairs)
        hm_loss = focal_vals[0]
        hm_hp_loss = focal_vals[1] if hmhp_focal else jnp.float32(0.0)
        if opt.hm_hp and opt.hm_hp_weight > 0 and opt.mse_loss:
            # Non-default branch: MSELoss on raw hm_hp (no sigmoid), plain JAX.
            hm_hp_loss = jnp.mean(
                (output['hm_hp'].astype(jnp.float32)
                 - batch['hm_hp'].astype(jnp.float32)) ** 2)

        # ------------------ fused regression losses (1 launch) --------------
        reg_entries = []   # (name, pred (B,K,C), mask (B,K,C), target (B,K,C))
        if not opt.dense_hp:
            reg_entries.append(
                ('hp', _gather_feat(output['hps'], batch['ind']),
                 batch['hps_mask'].astype(jnp.float32), batch['hps']))
        # TODO(synk): dense_hp branch (dense L1 over full keypoint map) not implemented.
        if opt.wh_weight > 0:
            m = jnp.broadcast_to(
                batch['reg_mask'][:, :, None].astype(jnp.float32),
                batch['wh'].shape)
            reg_entries.append(
                ('wh', _gather_feat(output['wh'], batch['ind']), m,
                 batch['wh']))
        if opt.reg_offset and opt.off_weight > 0:
            m = jnp.broadcast_to(
                batch['reg_mask'][:, :, None].astype(jnp.float32),
                batch['reg'].shape)
            reg_entries.append(
                ('off', _gather_feat(output['reg'], batch['ind']), m,
                 batch['reg']))
        if opt.reg_hp_offset and opt.off_weight > 0:
            m = jnp.broadcast_to(
                batch['hp_mask'][:, :, None].astype(jnp.float32),
                batch['hp_offset'].shape)
            reg_entries.append(
                ('hp_off', _gather_feat(output['hp_offset'], batch['hp_ind']),
                 m, batch['hp_offset']))

        if reg_entries:
            reg_vals = fused_reg_l1_loss([(p, m, t)
                                          for _, p, m, t in reg_entries])
        else:
            reg_vals = []
        reg_map = {e[0]: v for e, v in zip(reg_entries, reg_vals)}
        hp_loss = reg_map.get('hp', jnp.float32(0.0))
        wh_loss = reg_map.get('wh', jnp.float32(0.0))
        off_loss = reg_map.get('off', jnp.float32(0.0))
        hp_offset_loss = reg_map.get('hp_off', jnp.float32(0.0))

        loss = (opt.hm_weight * hm_loss + opt.wh_weight * wh_loss
                + opt.off_weight * off_loss + opt.hp_weight * hp_loss
                + opt.hm_hp_weight * hm_hp_loss
                + opt.off_weight * hp_offset_loss)
        loss_stats = {'loss': loss, 'hm_loss': hm_loss, 'hp_loss': hp_loss,
                      'hm_hp_loss': hm_hp_loss,
                      'hp_offset_loss': hp_offset_loss,
                      'wh_loss': wh_loss, 'off_loss': off_loss}
        return loss, loss_stats


# --------------------------- pure-JAX reference -------------------------------
def _ref_sigmoid(x):
    return jnp.clip(jax.nn.sigmoid(x), 1e-4, 1.0 - 1e-4)


def _ref_focal(pred, gt):
    pos = (gt == 1.0).astype(jnp.float32)
    neg = (gt < 1.0).astype(jnp.float32)
    neg_w = (1.0 - gt) ** 4
    pos_loss = jnp.log(pred) * (1.0 - pred) ** 2 * pos
    neg_loss = jnp.log(1.0 - pred) * pred ** 2 * neg_w * neg
    num_pos = jnp.sum(pos)
    return jnp.where(num_pos == 0.0, -jnp.sum(neg_loss),
                     -(jnp.sum(pos_loss) + jnp.sum(neg_loss)) / num_pos)


def _ref_gather(feat_nchw, ind):
    B, C, H, W = feat_nchw.shape
    f = jnp.transpose(feat_nchw, (0, 2, 3, 1)).reshape(B, H * W, C)
    idx = jnp.broadcast_to(ind[:, :, None], (B, ind.shape[1], C))
    return jnp.take_along_axis(f, idx, axis=1)


def _ref_reg_l1(output_nchw, mask_bkc, ind, target):
    pred = _ref_gather(output_nchw, ind)
    m = mask_bkc.astype(jnp.float32)
    return jnp.sum(jnp.abs(pred * m - target * m)) / (jnp.sum(m) + 1e-4)


def ref_forward(outputs, batch, opt):
    output = outputs[0]
    hm_loss = _ref_focal(_ref_sigmoid(output['hm']), batch['hm'])
    hp_loss = _ref_reg_l1(output['hps'], batch['hps_mask'], batch['ind'],
                          batch['hps'])
    wh_m = jnp.broadcast_to(batch['reg_mask'][:, :, None], batch['wh'].shape)
    wh_loss = _ref_reg_l1(output['wh'], wh_m, batch['ind'], batch['wh'])
    off_m = jnp.broadcast_to(batch['reg_mask'][:, :, None], batch['reg'].shape)
    off_loss = _ref_reg_l1(output['reg'], off_m, batch['ind'], batch['reg'])
    hpo_m = jnp.broadcast_to(batch['hp_mask'][:, :, None],
                             batch['hp_offset'].shape)
    hp_offset_loss = _ref_reg_l1(output['hp_offset'], hpo_m, batch['hp_ind'],
                                 batch['hp_offset'])
    hm_hp_loss = _ref_focal(_ref_sigmoid(output['hm_hp']), batch['hm_hp'])
    loss = (opt.hm_weight * hm_loss + opt.wh_weight * wh_loss
            + opt.off_weight * off_loss + opt.hp_weight * hp_loss
            + opt.hm_hp_weight * hm_hp_loss + opt.off_weight * hp_offset_loss)
    return loss


# --------------------------------- main ---------------------------------------
if __name__ == "__main__":
    opt = Opt()
    B, H, W = 2, 16, 16
    C_hm = 1          # person class
    J = 4             # num joints (small synthetic value)
    K = 8             # max objects
    K_hp = K * J      # max keypoints
    HW = H * W

    ks = jax.random.split(jax.random.PRNGKey(0), 20)

    outputs = [{
        'hm':        jax.random.normal(ks[0], (B, C_hm, H, W), jnp.float32),
        'hps':       jax.random.normal(ks[1], (B, 2 * J, H, W), jnp.float32),
        'wh':        jax.random.normal(ks[2], (B, 2, H, W), jnp.float32),
        'reg':       jax.random.normal(ks[3], (B, 2, H, W), jnp.float32),
        'hp_offset': jax.random.normal(ks[4], (B, 2, H, W), jnp.float32),
        'hm_hp':     jax.random.normal(ks[5], (B, J, H, W), jnp.float32),
    }]

    gt_hm = jax.random.uniform(ks[6], (B, C_hm, H, W), jnp.float32) * 0.9
    gt_hm = gt_hm.at[:, :, 4, 5].set(1.0).at[:, :, 10, 12].set(1.0)
    gt_hm_hp = jax.random.uniform(ks[7], (B, J, H, W), jnp.float32) * 0.9
    gt_hm_hp = gt_hm_hp.at[:, :, 3, 3].set(1.0)

    batch = {
        'hm': gt_hm,
        'hm_hp': gt_hm_hp,
        'ind': jax.random.randint(ks[8], (B, K), 0, HW, jnp.int32),
        'hp_ind': jax.random.randint(ks[9], (B, K_hp), 0, HW, jnp.int32),
        'reg_mask': (jax.random.uniform(ks[10], (B, K)) > 0.3
                     ).astype(jnp.float32),
        'hp_mask': (jax.random.uniform(ks[11], (B, K_hp)) > 0.3
                    ).astype(jnp.float32),
        'hps_mask': (jax.random.uniform(ks[12], (B, K, 2 * J)) > 0.3
                     ).astype(jnp.float32),
        'hps': jax.random.normal(ks[13], (B, K, 2 * J), jnp.float32),
        'wh': jax.random.uniform(ks[14], (B, K, 2), jnp.float32) * 5.0,
        'reg': jax.random.uniform(ks[15], (B, K, 2), jnp.float32),
        'hp_offset': jax.random.uniform(ks[16], (B, K_hp, 2), jnp.float32),
    }

    loss_fn = LossMultiPose(opt)
    loss, stats = loss_fn(outputs, batch)
    loss = jax.block_until_ready(loss)
    for v in stats.values():
        jax.block_until_ready(v)

    expected = jax.block_until_ready(ref_forward(outputs, batch, opt))
    np.testing.assert_allclose(np.asarray(loss), np.asarray(expected),
                               rtol=1e-4, atol=1e-5)
    print("KERNEL_OK")
</pallas_src>

<mosaic_0001>
module attributes {stable_mosaic.version = 11 : i64} {
  func.func @_focal_kernel(%arg0: i32, %arg1: memref<16x128xf32, #tpu.memory_space<vmem>>, %arg2: memref<16x128xf32, #tpu.memory_space<vmem>>, %arg3: memref<1x2xf32, #tpu.memory_space<smem>>, %arg4: memref<2x128xf32, #tpu.memory_space<vmem>>, %arg5: memref<2x128xf32, #tpu.memory_space<vmem>>, %arg6: memref<2x128xf32, #tpu.memory_space<vmem>>) attributes {dimension_semantics = [#tpu.dimension_semantics<arbitrary>], iteration_bounds = array<i64: 2>, scalar_prefetch = 0 : i64, scratch_operands = 3 : i64, tpu.core_type = #tpu.core_type<tc>, window_params = [{transform_indices = @transform_0, window_bounds = array<i64: 16, 128>}, {transform_indices = @transform_1, window_bounds = array<i64: 16, 128>}, {transform_indices = @transform_2, window_bounds = array<i64: 1, 2>}]} {
    %c0_i32 = arith.constant 0 : i32
    %0 = arith.cmpi eq, %arg0, %c0_i32 : i32
    %1 = arith.extui %0 : i1 to i32
    %c0_i32_0 = arith.constant 0 : i32
    %2 = arith.cmpi ne, %1, %c0_i32_0 : i32
    scf.if %2 {
      %cst_30 = arith.constant 0.000000e+00 : f32
      %70 = vector.broadcast %cst_30 : f32 to vector<2x128xf32>
      %c0_31 = arith.constant 0 : index
      %c0_32 = arith.constant 0 : index
      %71 = vector.load %arg4[%c0_31, %c0_32] : memref<2x128xf32, #tpu.memory_space<vmem>>, vector<2x128xf32>
      tpu.vector_store %arg4[%c0_31, %c0_32], %70 {strides = array<i32>} : memref<2x128xf32, #tpu.memory_space<vmem>>, vector<2x128xf32>,
      %cst_33 = arith.constant 0.000000e+00 : f32
      %72 = vector.broadcast %cst_33 : f32 to vector<2x128xf32>
      %c0_34 = arith.constant 0 : index
      %c0_35 = arith.constant 0 : index
      %73 = vector.load %arg5[%c0_34, %c0_35] : memref<2x128xf32, #tpu.memory_space<vmem>>, vector<2x128xf32>
      tpu.vector_store %arg5[%c0_34, %c0_35], %72 {strides = array<i32>} : memref<2x128xf32, #tpu.memory_space<vmem>>, vector<2x128xf32>,
      %cst_36 = arith.constant 0.000000e+00 : f32
      %74 = vector.broadcast %cst_36 : f32 to vector<2x128xf32>
      %c0_37 = arith.constant 0 : index
      %c0_38 = arith.constant 0 : index
      %75 = vector.load %arg6[%c0_37, %c0_38] : memref<2x128xf32, #tpu.memory_space<vmem>>, vector<2x128xf32>
      tpu.vector_store %arg6[%c0_37, %c0_38], %74 {strides = array<i32>} : memref<2x128xf32, #tpu.memory_space<vmem>>, vector<2x128xf32>,
    } else {
    }
    %c0 = arith.constant 0 : index
    %c0_1 = arith.constant 0 : index
    %3 = vector.load %arg1[%c0, %c0_1] : memref<16x128xf32, #tpu.memory_space<vmem>>, vector<16x128xf32>
    %c0_2 = arith.constant 0 : index
    %c0_3 = arith.constant 0 : index
    %4 = vector.load %arg2[%c0_2, %c0_3] : memref<16x128xf32, #tpu.memory_space<vmem>>, vector<16x128xf32>
    %5 = arith.negf %3 : vector<16x128xf32>
    %6 = math.exp %5 : vector<16x128xf32>
    %cst = arith.constant 1.000000e+00 : f32
    %7 = vector.broadcast %cst : f32 to vector<16x128xf32>
    %8 = arith.addf %7, %6 : vector<16x128xf32>
    %9 = arith.divf %7, %8 : vector<16x128xf32>
    %cst_4 = arith.constant 9.99999974E-5 : f32
    %cst_5 = arith.constant 0.999899983 : f32
    %10 = vector.broadcast %cst_4 : f32 to vector<16x128xf32>
    %11 = arith.maximumf %10, %9 : vector<16x128xf32>
    %12 = vector.broadcast %cst_5 : f32 to vector<16x128xf32>
    %13 = arith.minimumf %12, %11 : vector<16x128xf32>
    %cst_6 = arith.constant 1.000000e+00 : f32
    %14 = vector.broadcast %cst_6 : f32 to vector<16x128xf32>
    %15 = arith.cmpf oeq, %4, %14 : vector<16x128xf32>
    %16 = arith.extui %15 : vector<16x128xi1> to vector<16x128xi32>
    %17 = arith.sitofp %16 : vector<16x128xi32> to vector<16x128xf32>
    %cst_7 = arith.constant 1.000000e+00 : f32
    %18 = vector.broadcast %cst_7 : f32 to vector<16x128xf32>
    %19 = arith.cmpf olt, %4, %18 : vector<16x128xf32>
    %20 = arith.extui %19 : vector<16x128xi1> to vector<16x128xi32>
    %21 = arith.sitofp %20 : vector<16x128xi32> to vector<16x128xf32>
    %cst_8 = arith.constant 1.000000e+00 : f32
    %22 = vector.broadcast %cst_8 : f32 to vector<16x128xf32>
    %23 = arith.subf %22, %13 : vector<16x128xf32>
    %24 = arith.select %15, %13, %23 : vector<16x128xi1>, vector<16x128xf32>
    %25 = math.log %24 : vector<16x128xf32>
    %cst_9 = arith.constant 1.000000e+00 : f32
    %26 = vector.broadcast %cst_9 : f32 to vector<16x128xf32>
    %27 = arith.subf %26, %13 : vector<16x128xf32>
    %28 = arith.mulf %25, %27 : vector<16x128xf32>
    %29 = arith.mulf %28, %27 : vector<16x128xf32>
    %30 = arith.mulf %29, %17 : vector<16x128xf32>
    %cst_10 = arith.constant 1.000000e+00 : f32
    %31 = vector.broadcast %cst_10 : f32 to vector<16x128xf32>
    %32 = arith.subf %31, %4 : vector<16x128xf32>
    %33 = arith.mulf %32, %32 : vector<16x128xf32>
    %34 = arith.mulf %33, %33 : vector<16x128xf32>
    %35 = arith.mulf %25, %13 : vector<16x128xf32>
    %36 = arith.mulf %35, %13 : vector<16x128xf32>
    %37 = arith.mulf %36, %34 : vector<16x128xf32>
    %38 = arith.mulf %37, %21 : vector<16x128xf32>
    %cst_11 = arith.constant dense<0.000000e+00> : vector<128xf32>
    %39 = vector.multi_reduction <add>, %17, %cst_11 [0] : vector<16x128xf32> to vector<128xf32>
    %cst_12 = arith.constant dense<0.000000e+00> : vector<128xf32>
    %40 = vector.multi_reduction <add>, %30, %cst_12 [0] : vector<16x128xf32> to vector<128xf32>
    %cst_13 = arith.constant dense<0.000000e+00> : vector<128xf32>
    %41 = vector.multi_reduction <add>, %38, %cst_13 [0] : vector<16x128xf32> to vector<128xf32>
    %c1_i32 = arith.constant 1 : i32
    %42 = arith.cmpi sge, %arg0, %c1_i32 : i32
    %c1_i32_14 = arith.constant 1 : i32
    %c0_i32_15 = arith.constant 0 : i32
    %43 = arith.select %42, %c1_i32_14, %c0_i32_15 : i32
    %44 = tpu.iota {dimensions = array<i32: 0>} : vector<2x128xi32>
    %45 = vector.broadcast %43 : i32 to vector<2x128xi32>
    %46 = arith.cmpi eq, %44, %45 : vector<2x128xi32>
    %47 = arith.extui %46 : vector<2x128xi1> to vector<2x128xi32>
    %48 = arith.sitofp %47 : vector<2x128xi32> to vector<2x128xf32>
    %c0_16 = arith.constant 0 : index
    %c0_17 = arith.constant 0 : index
    %49 = vector.load %arg4[%c0_16, %c0_17] : memref<2x128xf32, #tpu.memory_space<vmem>>, vector<2x128xf32>
    %50 = vector.shape_cast %39 : vector<128xf32> to vector<1x128xf32>
    %51 = vector.broadcast %50 : vector<1x128xf32> to vector<2x128xf32>
    %52 = arith.mulf %48, %51 : vector<2x128xf32>
    %53 = arith.addf %49, %52 : vector<2x128xf32>
    %c0_18 = arith.constant 0 : index
    %c0_19 = arith.constant 0 : index
    %54 = vector.load %arg4[%c0_18, %c0_19] : memref<2x128xf32, #tpu.memory_space<vmem>>, vector<2x128xf32>
    tpu.vector_store %arg4[%c0_18, %c0_19], %53 {strides = array<i32>} : memref<2x128xf32, #tpu.memory_space<vmem>>, vector<2x128xf32>,
    %c0_20 = arith.constant 0 : index
    %c0_21 = arith.constant 0 : index
    %55 = vector.load %arg5[%c0_20, %c0_21] : memref<2x128xf32, #tpu.memory_space<vmem>>, vector<2x128xf32>
    %56 = vector.shape_cast %40 : vector<128xf32> to vector<1x128xf32>
    %57 = vector.broadcast %56 : vector<1x128xf32> to vector<2x128xf32>
    %58 = arith.mulf %48, %57 : vector<2x128xf32>
    %59 = arith.addf %55, %58 : vector<2x128xf32>
    %c0_22 = arith.constant 0 : index
    %c0_23 = arith.constant 0 : index
    %60 = vector.load %arg5[%c0_22, %c0_23] : memref<2x128xf32, #tpu.memory_space<vmem>>, vector<2x128xf32>
    tpu.vector_store %arg5[%c0_22, %c0_23], %59 {strides = array<i32>} : memref<2x128xf32, #tpu.memory_space<vmem>>, vector<2x128xf32>,
    %c0_24 = arith.constant 0 : index
    %c0_25 = arith.constant 0 : index
    %61 = vector.load %arg6[%c0_24, %c0_25] : memref<2x128xf32, #tpu.memory_space<vmem>>, vector<2x128xf32>
    %62 = vector.shape_cast %41 : vector<128xf32> to vector<1x128xf32>
    %63 = vector.broadcast %62 : vector<1x128xf32> to vector<2x128xf32>
    %64 = arith.mulf %48, %63 : vector<2x128xf32>
    %65 = arith.addf %61, %64 : vector<2x128xf32>
    %c0_26 = arith.constant 0 : index
    %c0_27 = arith.constant 0 : index
    %66 = vector.load %arg6[%c0_26, %c0_27] : memref<2x128xf32, #tpu.memory_space<vmem>>, vector<2x128xf32>
    tpu.vector_store %arg6[%c0_26, %c0_27], %65 {strides = array<i32>} : memref<2x128xf32, #tpu.memory_space<vmem>>, vector<2x128xf32>,
    %c1_i32_28 = arith.constant 1 : i32
    %67 = arith.cmpi eq, %arg0, %c1_i32_28 : i32
    %68 = arith.extui %67 : i1 to i32
    %c0_i32_29 = arith.constant 0 : i32
    %69 = arith.cmpi ne, %68, %c0_i32_29 : i32
    scf.if %69 {
      %c0_30 = arith.constant 0 : index
      %c0_31 = arith.constant 0 : index
      %70 = vector.load %arg4[%c0_30, %c0_31] : memref<2x128xf32, #tpu.memory_space<vmem>>, vector<1x128xf32>
      %71 = vector.shape_cast %70 : vector<1x128xf32> to vector<128xf32>
      %72 = vector.shape_cast %71 : vector<128xf32> to vector<1x128xf32>
      %cst_32 = arith.constant dense<0.000000e+00> : vector<1xf32>
      %73 = vector.multi_reduction <add>, %72, %cst_32 [1] : vector<1x128xf32> to vector<1xf32>
      %74 = vector.shape_cast %73 : vector<1xf32> to vector<1x1xf32>
      %75 = vector.extract %74[0, 0] : f32 from vector<1x1xf32>
      %c0_33 = arith.constant 0 : index
      %c0_34 = arith.constant 0 : index
      %76 = vector.load %arg5[%c0_33, %c0_34] : memref<2x128xf32, #tpu.memory_space<vmem>>, vector<1x128xf32>
      %77 = vector.shape_cast %76 : vector<1x128xf32> to vector<128xf32>
      %78 = vector.shape_cast %77 : vector<128xf32> to vector<1x128xf32>
      %cst_35 = arith.constant dense<0.000000e+00> : vector<1xf32>
      %79 = vector.multi_reduction <add>, %78, %cst_35 [1] : vector<1x128xf32> to vector<1xf32>
      %80 = vector.shape_cast %79 : vector<1xf32> to vector<1x1xf32>
      %81 = vector.extract %80[0, 0] : f32 from vector<1x1xf32>
      %c0_36 = arith.constant 0 : index
      %c0_37 = arith.constant 0 : index
      %82 = vector.load %arg6[%c0_36, %c0_37] : memref<2x128xf32, #tpu.memory_space<vmem>>, vector<1x128xf32>
      %83 = vector.shape_cast %82 : vector<1x128xf32> to vector<128xf32>
      %84 = vector.shape_cast %83 : vector<128xf32> to vector<1x128xf32>
      %cst_38 = arith.constant dense<0.000000e+00> : vector<1xf32>
      %85 = vector.multi_reduction <add>, %84, %cst_38 [1] : vector<1x128xf32> to vector<1xf32>
      %86 = vector.shape_cast %85 : vector<1xf32> to vector<1x1xf32>
      %87 = vector.extract %86[0, 0] : f32 from vector<1x1xf32>
      %cst_39 = arith.constant 0.000000e+00 : f32
      %88 = arith.cmpf oeq, %75, %cst_39 : f32
      %cst_40 = arith.constant 0.000000e+00 : f32
      %89 = arith.subf %cst_40, %87 : f32
      %90 = arith.addf %81, %87 : f32
      %cst_41 = arith.constant 0.000000e+00 : f32
      %91 = arith.subf %cst_41, %90 : f32
      %92 = arith.divf %91, %75 : f32
      %93 = arith.select %88, %89, %92 : f32
      %c0_42 = arith.constant 0 : index
      %c0_43 = arith.constant 0 : index
      %94 = memref.load %arg3[%c0_42, %c0_43] : memref<1x2xf32, #tpu.memory_space<smem>>
      memref.store %93, %arg3[%c0_42, %c0_43] : memref<1x2xf32, #tpu.memory_space<smem>>
      %c1 = arith.constant 1 : index
      %c0_44 = arith.constant 0 : index
      %95 = vector.load %arg4[%c1, %c0_44] : memref<2x128xf32, #tpu.memory_space<vmem>>, vector<1x128xf32>
      %96 = vector.shape_cast %95 : vector<1x128xf32> to vector<128xf32>
      %97 = vector.shape_cast %96 : vector<128xf32> to vector<1x128xf32>
      %cst_45 = arith.constant dense<0.000000e+00> : vector<1xf32>
      %98 = vector.multi_reduction <add>, %97, %cst_45 [1] : vector<1x128xf32> to vector<1xf32>
      %99 = vector.shape_cast %98 : vector<1xf32> to vector<1x1xf32>
      %100 = vector.extract %99[0, 0] : f32 from vector<1x1xf32>
      %c1_46 = arith.constant 1 : index
      %c0_47 = arith.constant 0 : index
      %101 = vector.load %arg5[%c1_46, %c0_47] : memref<2x128xf32, #tpu.memory_space<vmem>>, vector<1x128xf32>
      %102 = vector.shape_cast %101 : vector<1x128xf32> to vector<128xf32>
      %103 = vector.shape_cast %102 : vector<128xf32> to vector<1x128xf32>
      %cst_48 = arith.constant dense<0.000000e+00> : vector<1xf32>
      %104 = vector.multi_reduction <add>, %103, %cst_48 [1] : vector<1x128xf32> to vector<1xf32>
      %105 = vector.shape_cast %104 : vector<1xf32> to vector<1x1xf32>
      %106 = vector.extract %105[0, 0] : f32 from vector<1x1xf32>
      %c1_49 = arith.constant 1 : index
      %c0_50 = arith.constant 0 : index
      %107 = vector.load %arg6[%c1_49, %c0_50] : memref<2x128xf32, #tpu.memory_space<vmem>>, vector<1x128xf32>
      %108 = vector.shape_cast %107 : vector<1x128xf32> to vector<128xf32>
      %109 = vector.shape_cast %108 : vector<128xf32> to vector<1x128xf32>
      %cst_51 = arith.constant dense<0.000000e+00> : vector<1xf32>
      %110 = vector.multi_reduction <add>, %109, %cst_51 [1] : vector<1x128xf32> to vector<1xf32>
      %111 = vector.shape_cast %110 : vector<1xf32> to vector<1x1xf32>
      %112 = vector.extract %111[0, 0] : f32 from vector<1x1xf32>
      %cst_52 = arith.constant 0.000000e+00 : f32
      %113 = arith.cmpf oeq, %100, %cst_52 : f32
      %cst_53 = arith.constant 0.000000e+00 : f32
      %114 = arith.subf %cst_53, %112 : f32
      %115 = arith.addf %106, %112 : f32
      %cst_54 = arith.constant 0.000000e+00 : f32
      %116 = arith.subf %cst_54, %115 : f32
      %117 = arith.divf %116, %100 : f32
      %118 = arith.select %113, %114, %117 : f32
      %c0_55 = arith.constant 0 : index
      %c1_56 = arith.constant 1 : index
      %119 = memref.load %arg3[%c0_55, %c1_56] : memref<1x2xf32, #tpu.memory_space<smem>>
      memref.store %118, %arg3[%c0_55, %c1_56] : memref<1x2xf32, #tpu.memory_space<smem>>
    } else {
    }
    return
  }
  func.func @transform_0(%arg0: i32) -> (i32, i32) {
    %c0_i32 = arith.constant 0 : i32
    %c0_i32_0 = arith.constant 0 : i32
    return %arg0, %c0_i32 : i32, i32
  }
  func.func @transform_1(%arg0: i32) -> (i32, i32) {
    %c0_i32 = arith.constant 0 : i32
    %c0_i32_0 = arith.constant 0 : i32
    return %arg0, %c0_i32 : i32, i32
  }
  func.func @transform_2(%arg0: i32) -> (i32, i32) {
    %c0_i32 = arith.constant 0 : i32
    %c0_i32_0 = arith.constant 0 : i32
    %c0_i32_1 = arith.constant 0 : i32
    return %c0_i32, %c0_i32_0 : i32, i32
  }
}

</mosaic_0001>

<bundles_post_ra>
// kernel: tpu_custom_call.1
= control target key start
LH: loop header
LB: loop body
LE: loop exit
PB: predicated region body
PF: predicated region fallthrough
CT: control target
= control target key end

     0   :  { %7 = vsyncpa [#allocation6], 0  ;;  %s890_s0 = inlined_call_operand.hbm [shape: f32[32,128], index: 0, kind: input, shape index: {}]   ;;  %s891_s1 = inlined_call_operand.hbm [shape: f32[32,128], index: 1, kind: input, shape index: {}]   ;;  %s892_s2 = inlined_call_operand.hbm [shape: f32[1,2], index: 2, kind: output, shape index: {}]  }
   0x1   :  { %9 = vsyncpa [#allocation6 + $0x1], 0 }
   0x2   :  { %10 = vsyncpa [#allocation9], 0 }
   0x3   :  { %12 = vsyncpa [#allocation9 + $0x1], 0 }
   0x4   :  { %13 = vsyncpa [#allocation7], 0  ;;  %s688_s9 = smov 0   ;;  %s690_s10 = smov 0  }
   0x5   :  { %s692_s11 = smov 0   ;;  %s694_s12 = smov 0  }
   0x6 LB: > { %s707_s13 = sadd.s32 4294967295, %s664_s12   ;;  %s710_s14 = sadd.s32 1, %s664_s12   ;;  %s664_s12 = sphi %s694_s12, %s902_s12   ;;  %s660_s11 = sphi %s692_s11, %s901_s11   ;;  %s656_s10 = sphi %s690_s10, %s900_s10   ;;  %s652_s9 = sphi %s688_s9, %s899_s9  }
   0x7   : > { %s23_s15 = ssub.s32 %s664_s12, %s710_s14  ;;  %s26_s16 = sadd.s32 1, %s660_s11 }
   0x8   : > { %p24_p0 = scmp.eq.s32.totalorder %s23_s15, 0  ;;  %p33_p1 = scmp.ne.s32.totalorder %s660_s11, %s656_s10 }
   0x9   : > { %p34_p2 = scmp.eq.s32.totalorder %s664_s12, 0  ;;  %p39_p3 = scmp.ne.s32.totalorder %s656_s10, %s652_s9 }
   0xa   : > { %s720_s17 = scalar_select %p24_p0, %s660_s11, %s26_s16  }
   0xb   : > { %p35_p4 = por %p34_p2, %p33_p1  ;;  %p40_p5 = scmp.eq.s32.totalorder %s707_s13, 0 }
   0xc   : > { %p494_p6 = scmp.lt.s32.totalorder %s664_s12, 2  ;;  %s729_s19 = sand.u32 1, %s660_s11  }
   0xd   : > { %p724_p7 = por %p40_p5, %p39_p3  ;;  %s439_s20 = sshll.u32 %s729_s19, 4 }
   0xe   : > { %s461_s21 = sshll.u32 %s664_s12, 8  ;;  %s114_s25 = scalar_lea.vmem [#allocation5], %s439_s20 }
   0xf   : > { %s894_s18 = scalar_select %p724_p7, 1, 0 }
  0x10   : > { %s738_s24 = scalar_lea.hbm %s890_s0, %s461_s21  ;;  %s121_s26 = sshll.u32 %s114_s25, 4  ;;  %s742_s26 = int_to_ptr.vmem [resolvable:$true] %s121_s26 }
  0x11   : > { %p744_p8 = pnand %p494_p6, %p35_p4  ;;  %s111_s28 = scalar_lea.sflag [#allocation6], %s729_s19 }
  0x12   : > { %s550_s29 = scalar_lea.hbm %s738_s24, 256  ;;  %s555_s4 = scalar_lea.hbm %s890_s0, 512 }
  0x13   : > { %p551_p10 = scmp.ne.s32.totalorder %s738_s24, %s550_s29  ;;  %p552_p11 = pneg %p744_p8 }
  0x14   : > { %p556_p0 = scmp.lt.u32.totalorder %s738_s24, %s890_s0  ;;  %p557_p1 = scmp.lt.u32.totalorder %s555_s4, %s550_s29 }
  0x15   : > { %p553_p12 = pnand %p552_p11, %p551_p10  ;;  %p559_p3 = scmp.lt.u32.totalorder %s550_s29, %s738_s24 }
  0x16   : > { %p558_p2 = por %p557_p1, %p556_p0 }
  0x17   : > { %p554_p13 = pneg %p553_p12 }
  0x18   : > { %p560_p4 = por %p559_p3, %p558_p2 }
  0x1a   : > { %p561_p5 = pnand %p560_p4, %p554_p13 }
  0x1c   : > { %564 = shalt.err (!%p561_p5)
}
  0x1d   : > { %s565_s7 = scalar_lea.vmem %s742_s26, 256  ;;  %s666_s8 = smov [#allocation5]  }
  0x1e   : > { %p566_p6 = scmp.ne.s32.totalorder %s742_s26, %s565_s7  ;;  %s570_s9 = sshll.u32 %s666_s8, 4  ;;  %s571_s9 = int_to_ptr.vmem [resolvable:$false] %s570_s9 }
  0x1f   : > { %s572_s15 = scalar_lea.vmem %s571_s9, 512  ;;  %p573_p9 = scmp.lt.s32.totalorder %s742_s26, %s571_s9 }
  0x20   : > { %p568_p10 = pnand %p566_p6, %p552_p11  ;;  %p574_p0 = scmp.lt.s32.totalorder %s572_s15, %s565_s7 }
  0x22   : > { %p569_p12 = pneg %p568_p10  ;;  %p575_p1 = por %p574_p0, %p573_p9 }
  0x24   : > { %p576_p2 = pnand %p575_p1, %p569_p12 }
  0x26   : > { %579 = shalt.err (!%p576_p2)
}
  0x27   : > { %s667_s16 = smov 128   ;;  %s668_s22 = smov 8  }
  0x28   : > { %490 = dma.hbm_to_vmem [thread:$0]  (!%p744_p8), %s738_s24, 256, %s742_s26, %s111_s28, %s667_s16, %s667_s16, %s668_s22  }
  0x29   : > { %p150_p9 = scmp.lt.s32.totalorder %s664_s12, 3  ;;  %s786_s29 = scalar_lea.hbm %s891_s1, %s461_s21 }
  0x2a   : > { %p896_p13 = scmp.ge.s32.totalorder %s664_s12, 1  ;;  %s135_s3 = scalar_lea.vmem [#allocation8], %s439_s20 }
  0x2b   : > { %s142_s4 = sshll.u32 %s135_s3, 4  ;;  %s132_s24 = scalar_lea.sflag [#allocation9], %s729_s19  ;;  %s796_s4 = int_to_ptr.vmem [resolvable:$true] %s142_s4 }
  0x2c   : > { %p790_p3 = pnand %p896_p13, %p150_p9  ;;  %s580_s26 = scalar_lea.hbm %s786_s29, 256 }
  0x2d   : > { %p581_p4 = scmp.ne.s32.totalorder %s786_s29, %s580_s26  ;;  %s585_s28 = scalar_lea.hbm %s891_s1, 512 }
  0x2e   : > { %p586_p10 = scmp.lt.u32.totalorder %s786_s29, %s891_s1  ;;  %p587_p12 = scmp.lt.u32.totalorder %s585_s28, %s580_s26 }
  0x2f   : > { %p583_p5 = pnand %p581_p4, %p552_p11  ;;  %p589_p1 = scmp.lt.u32.totalorder %s580_s26, %s786_s29 }
  0x30   : > { %p588_p0 = por %p587_p12, %p586_p10 }
  0x31   : > { %p584_p6 = pneg %p583_p5 }
  0x32   : > { %p590_p2 = por %p589_p1, %p588_p0 }
  0x34   : > { %p591_p9 = pnand %p590_p2, %p584_p6 }
  0x36   : > { %594 = shalt.err (!%p591_p9)
}
  0x37   : > { %s595_s20 = scalar_lea.vmem %s796_s4, 256  ;;  %s669_s7 = smov [#allocation8]  }
  0x38   : > { %p596_p13 = scmp.ne.s32.totalorder %s796_s4, %s595_s20  ;;  %s600_s8 = sshll.u32 %s669_s7, 4  ;;  %s601_s8 = int_to_ptr.vmem [resolvable:$false] %s600_s8 }
  0x39   : > { %s602_s9 = scalar_lea.vmem %s601_s8, 512  ;;  %p603_p7 = scmp.lt.s32.totalorder %s796_s4, %s601_s8 }
  0x3a   : > { %p598_p4 = pnand %p596_p13, %p552_p11  ;;  %p604_p10 = scmp.lt.s32.totalorder %s602_s9, %s595_s20 }
  0x3c   : > { %p599_p5 = pneg %p598_p4  ;;  %p605_p12 = por %p604_p10, %p603_p7 }
  0x3e   : > { %p606_p0 = pnand %p605_p12, %p599_p5 }
  0x40   : > { %609 = shalt.err (!%p606_p0)
}
  0x41   : > { %493 = dma.hbm_to_vmem [thread:$0]  (!%p744_p8), %s786_s29, 256, %s796_s4, %s132_s24, %s667_s16, %s667_s16, %s668_s22  }
  0x42   : > { %154 = sbr.rel (%p790_p3) target bundleno = 452 (0x1c4), region = 28  ;;  %s156_s15 = sand.u32 (!%p790_p3), 1, %s656_s10  }
  0x43   : > { %s446_s23 = sshll.u32 (!%p790_p3), %s156_s15, 4  ;;  %s157_s25 = scalar_lea.sflag (!%p790_p3), [#allocation6], %s156_s15 }
  0x44   : > { %s160_s3 = scalar_lea.vmem (!%p790_p3), [#allocation5], %s446_s23  ;;  %p898_p7 = scmp.ne.s32.totalorder (!%p790_p3), %s894_s18, 0 }
  0x49   : > { %639 = dma.done.wait (%p898_p7), %s157_s25, 256  }
  0x4a   : > { %641 = vsyncadd (%p898_p7), %s157_s25, 4294967040  ;;  %s166_s27 = scalar_lea.sflag [#allocation9], %s156_s15  ;;  %s169_s19 = scalar_lea.vmem [#allocation8], %s446_s23 }
  0x4b   : > { %643 = dma.done.wait (%p898_p7), %s166_s27, 256  }
  0x4c   : > { %645 = vsyncadd (%p898_p7), %s166_s27, 4294967040  ;;  %p448_p8 = scmp.ne.s32.totalorder %s707_s13, 0 }
  0x4d   : > { %v670_v0 = vmov (!%p448_p8), 0.0  }
  0x4e   : > { %195 = sbr.rel (%p448_p8) target bundleno = 85 (0x55), region = 40  ;;  %196 = vst [vmem:[#allocation2] sm:$0x3] (!%p448_p8), %v670_v0  ;;  %197 = vst [vmem:[#allocation3] sm:$0x3] (!%p448_p8), %v670_v0 }
  0x4f   : > { %198 = vst [vmem:[#allocation4] sm:$0x3] (!%p448_p8), %v670_v0 }
  0x55 PF: > { %v199_v1 = vld [vmem:[%s160_s3] sm:$0xff]  ;;  %v200_v2 = vld [vmem:[%s160_s3 + $0x8] sm:$0xff]  ;;  %p280_p11 = scmp.ge.s32.totalorder %s707_s13, 1  ;;  %v671_v7 = vmov 0.0   ;;  %v282_v11 = vlaneseq  ;;  %p456_p3 = scmp.ne.s32.totalorder %s707_s13, 1 }
  0x56   : > { %v839_v3 = vld [vmem:[%s169_s19] sm:$0xff]  ;;  %v841_v4 = vld [vmem:[%s169_s19 + $0x8] sm:$0xff]  ;;  %v449_v5 = vmul.f32 -1.442695, %v199_v1  ;;  %v450_v6 = vmul.f32 -1.442695, %v200_v2 }
  0x57   : > { %vm219_vm0 = vcmp.eq.f32.partialorder %v839_v3, 1.0  ;;  %vm220_vm1 = vcmp.eq.f32.partialorder %v841_v4, 1.0  ;;  %s281_s18 = scalar_select %p280_p11, 1, 0  ;;  %v283_v14 = vshrl.u32 %v282_v11, 7  ;;  %v245_v38 = vsub.f32 1.0, %v839_v3 }
  0x58   : > { %534 = vpow2.f32 %v449_v5  ;;  %v451_v8 = vsel %vm219_vm0, 1.0, %v671_v7  ;;  %v452_v9 = vsel %vm220_vm1, 1.0, %v671_v7  ;;  %v288_v25 = vld [vmem:[#allocation2] sm:$0x3]  ;;  %v246_v39 = vsub.f32 1.0, %v841_v4 }
  0x59   : > { %536 = vpow2.f32 %v450_v6  ;;  %v259_v10 = vadd.f32 %v452_v9, %v451_v8  ;;  %v284_v15 = vstv %s281_s18  ;;  %v247_v40 = vmul.f32 %v245_v38, %v245_v38 }
  0x5a   : > { %vm285_vm2 = vcmp.eq.s32.totalorder %v283_v14, %v284_v15  ;;  %v248_v42 = vmul.f32 %v246_v39, %v246_v39  ;;  %vm225_vm3 = vcmp.lt.f32.partialorder %v839_v3, 1.0  ;;  %vm226_vm4 = vcmp.lt.f32.partialorder %v841_v4, 1.0 }
  0x5b   : > { %v260_v12 = vrot.slane %v259_v10, 4  ;;  %v850_v23 = vsel %vm285_vm2, 1.0, %v671_v7  ;;  %v249_v47 = vmul.f32 %v247_v40, %v247_v40  ;;  %v453_v55 = vsel %vm225_vm3, 1.0, %v671_v7 }
  0x5c   : > { %v250_v50 = vmul.f32 %v248_v42, %v248_v42  ;;  %v454_v58 = vsel %vm226_vm4, 1.0, %v671_v7  ;;  %vm305_vm5 = vcmask (!%p456_p3), 1040384  }
  0x5d   : > { %v261_v13 = vadd.f32 %v260_v12, %v259_v10 }
  0x5f   : > { %v262_v16 = vrot.slane %v261_v13, 2 }
  0x61   : > { %v263_v17 = vadd.f32 %v262_v16, %v261_v13  ;;  %v296_v16 = vld [vmem:[#allocation4] sm:$0x3] }
  0x62   : > { %v535_v18 = vpop.eup %534 }
  0x63   : > { %v537_v19 = vpop.eup %536  ;;  %v209_v20 = vadd.f32 1.0, %v535_v18  ;;  %v264_v21 = vrot.slane %v263_v17, 1 }
  0x64   : > { %v210_v22 = vadd.f32 1.0, %v537_v19 }
  0x65   : > { %538 = vrcp.f32 %v209_v20  ;;  %v265_v24 = vadd.f32 %v264_v21, %v263_v17 }
  0x66   : > { %540 = vrcp.f32 %v210_v22 }
  0x67   : > { %v289_v26 = vmul.f32 %v850_v23, %v265_v24 }
  0x69   : > { %v290_v27 = vadd.f32 %v289_v26, %v288_v25 }
  0x6b   : > { %291 = vst [vmem:[#allocation2] sm:$0x3] %v290_v27 }
  0x6f   : > { %v539_v28 = vpop.eup %538 }
  0x70   : > { %v541_v29 = vpop.eup %540  ;;  %v215_v30 = vmax.f32 %v539_v28, 0.0001 }
  0x71   : > { %v216_v31 = vmax.f32 %v541_v29, 0.0001 }
  0x72   : > { %v217_v32 = vmin.f32 %v215_v30, 0.9999  ;;  %v304_v20 = vld [vmem:[#allocation2] sm:$0x1] (!%p456_p3)  ;;  %v331_v26 = vld [vmem:[#allocation2 + $0x1] sm:$0x1] (!%p456_p3) }
  0x73   : > { %v218_v33 = vmin.f32 %v216_v31, 0.9999  ;;  %v306_v22 = vsel (!%p456_p3), %vm305_vm5, %v304_v20, 0.0  ;;  %v332_v28 = vsel (!%p456_p3), %vm305_vm5, %v331_v26, 0.0 }
  0x74   : > { %v231_v34 = vsub.f32 1.0, %v217_v32  ;;  %307 = vadd.xlane.f32.xlu0 (!%p456_p3), %v306_v22 }
  0x75   : > { %v232_v35 = vsub.f32 1.0, %v218_v33 }
  0x76   : > { %v233_v36 = vsel %vm219_vm0, %v217_v32, %v231_v34 }
  0x77   : > { %v234_v37 = vsel %vm220_vm1, %v218_v33, %v232_v35  ;;  %542 = vlog2.f32 %v233_v36 }
  0x78   : > { %544 = vlog2.f32 %v234_v37 }
  0x81   : > { %v543_v41 = vpop.eup %542 }
  0x82   : > { %v545_v43 = vpop.eup %544  ;;  %v236_v44 = vmul.f32 0.6931472, %v543_v41 }
  0x83   : > { %v238_v45 = vmul.f32 0.6931472, %v545_v43 }
  0x84   : > { %v239_v46 = vmul.f32 %v236_v44, %v231_v34  ;;  %v251_v48 = vmul.f32 %v236_v44, %v217_v32 }
  0x85   : > { %v240_v49 = vmul.f32 %v238_v45, %v232_v35  ;;  %v252_v51 = vmul.f32 %v238_v45, %v218_v33 }
  0x86   : > { %v241_v52 = vmul.f32 %v239_v46, %v231_v34  ;;  %v253_v53 = vmul.f32 %v251_v48, %v217_v32 }
  0x87   : > { %v242_v54 = vmul.f32 %v240_v49, %v232_v35  ;;  %v254_v56 = vmul.f32 %v252_v51, %v218_v33 }
  0x88   : > { %v243_v57 = vmul.f32 %v451_v8, %v241_v52  ;;  %v255_v59 = vmul.f32 %v253_v53, %v249_v47  ;;  %v292_v8 = vld [vmem:[#allocation3] sm:$0x3] }
  0x89   : > { %v244_v60 = vmul.f32 %v452_v9, %v242_v54  ;;  %v256_v61 = vmul.f32 %v254_v56, %v250_v50 }
  0x8a   : > { %v257_v62 = vmul.f32 %v453_v55, %v255_v59 }
  0x8b   : > { %v266_v63 = vadd.f32 %v244_v60, %v243_v57  ;;  %v258_v0 = vmul.f32 %v454_v58, %v256_v61 }
  0x8d   : > { %v267_v1 = vrot.slane %v266_v63, 4  ;;  %v273_v2 = vadd.f32 %v258_v0, %v257_v62 }
  0x8f   : > { %v268_v3 = vadd.f32 %v267_v1, %v266_v63  ;;  %v274_v5 = vrot.slane %v273_v2, 4 }
  0x91   : > { %v269_v4 = vrot.slane %v268_v3, 2  ;;  %v275_v6 = vadd.f32 %v274_v5, %v273_v2 }
  0x93   : > { %v270_v10 = vadd.f32 %v269_v4, %v268_v3  ;;  %v276_v11 = vrot.slane %v275_v6, 2 }
  0x95   : > { %v271_v12 = vrot.slane %v270_v10, 1  ;;  %v277_v13 = vadd.f32 %v276_v11, %v275_v6 }
  0x97   : > { %v272_v14 = vadd.f32 %v271_v12, %v270_v10  ;;  %v278_v15 = vrot.slane %v277_v13, 1 }
  0x99   : > { %v293_v7 = vmul.f32 %v850_v23, %v272_v14  ;;  %v279_v9 = vadd.f32 %v278_v15, %v277_v13  ;;  %303 = sbr.rel (%p456_p3) target bundleno = 437 (0x1b5), region = 44 }
  0x9b   : > { %v294_v17 = vadd.f32 %v293_v7, %v292_v8  ;;  %v297_v18 = vmul.f32 %v850_v23, %v279_v9 }
  0x9d   : > { %295 = vst [vmem:[#allocation3] sm:$0x3] %v294_v17  ;;  %v298_v19 = vadd.f32 %v297_v18, %v296_v16 }
  0x9f   : > { %299 = vst [vmem:[#allocation4] sm:$0x3] %v298_v19 }
  0xa4   : > { %v310_v25 = vld [vmem:[#allocation3] sm:$0x1]  ;;  %v336_v30 = vld [vmem:[#allocation3 + $0x1] sm:$0x1] }
  0xa5   : > { %v311_v27 = vsel %vm305_vm5, %v310_v25, 0.0  ;;  %v337_v31 = vsel %vm305_vm5, %v336_v30, 0.0 }
  0xa6   : > { %v315_v21 = vld [vmem:[#allocation4] sm:$0x1]  ;;  %v341_v29 = vld [vmem:[#allocation4 + $0x1] sm:$0x1]  ;;  %312 = vadd.xlane.f32.xlu0 %v311_v27 }
  0xa7   : > { %v316_v24 = vsel %vm305_vm5, %v315_v21, 0.0  ;;  %v342_v23 = vsel %vm305_vm5, %v341_v29, 0.0 }
  0xa8   : > { %317 = vadd.xlane.f32.xlu1 %v316_v24 }
  0xaa   : > { %338 = vadd.xlane.f32.xlu0 %v337_v31 }
  0xac   : > { %333 = vadd.xlane.f32.xlu1 %v332_v28 }
  0xb0   : > { %343 = vadd.xlane.f32.xlu1 %v342_v23 }
 0x101   : > { %v308_v32 = vpop.xlane.xlu0 %307 }
 0x102   : > { %463 = vpush %v308_v32 }
 0x133   : > { %v313_v34 = vpop.xlane.xlu0 %312  ;;  %s464_s16 = spop %463 }
 0x134   : > { %465 = vpush %v313_v34  ;;  %v324_v35 = vstv %s464_s16  ;;  %p320_p6 = scmp.eq.f32.partialorder %s464_s16, 0.0 }
 0x135   : > { %v318_v33 = vpop.xlane.xlu1 %317  ;;  %546 = vrcp.f32 %v324_v35 }
 0x136   : > { %467 = vpush %v318_v33 }
 0x137   : > { %v339_v38 = vpop.xlane.xlu0 %338 }
 0x139   : > { %v334_v36 = vpop.xlane.xlu1 %333 }
 0x13d   : > { %v344_v39 = vpop.xlane.xlu1 %343 }
 0x13f   : > { %v547_v37 = vpop.eup %546 }
 0x140   : > { %469 = vpush %v547_v37 }
 0x141   : > { %471 = vpush %v334_v36 }
 0x142   : > { %473 = vpush %v339_v38 }
 0x143   : > { %475 = vpush %v344_v39 }
 0x165   : > { %s466_s22 = spop %465 }
 0x167   : > { %s468_s29 = spop %467 }
 0x168   : > { %s322_s30 = sadd.f32 %s468_s29, %s466_s22 }
 0x169   : > { %s321_s24 = ssub.f32 0.0, %s468_s29 }
 0x16a   : > { %s323_s4 = ssub.f32 0.0, %s322_s30 }
 0x171   : > { %s470_s26 = spop %469 }
 0x172   : > { %s327_s12 = smul.f32 %s470_s26, %s323_s4  ;;  %s472_s21 = spop %471 }
 0x173   : > { %v350_v40 = vstv %s472_s21  ;;  %s474_s28 = spop %473  ;;  %p346_p1 = scmp.eq.f32.partialorder %s472_s21, 0.0 }
 0x174   : > { %s904_s24 = smov (!%p320_p6, %s321_s24), %s327_s12  ;;  %548 = vrcp.f32 %v350_v40  ;;  %s476_s5 = spop %475 }
 0x175   : > { %330 = sst [smem:[#allocation10]] %s904_s24 }
 0x176   : > { %s348_s6 = sadd.f32 %s476_s5, %s474_s28 }
 0x177   : > { %s347_s8 = ssub.f32 0.0, %s476_s5 }
 0x178   : > { %s349_s20 = ssub.f32 0.0, %s348_s6 }
 0x17e   : > { %v549_v41 = vpop.eup %548 }
 0x17f   : > { %477 = vpush %v549_v41 }
 0x1b0   : > { %s478_s7 = spop %477 }
 0x1b1   : > { %s353_s9 = smul.f32 %s478_s7, %s349_s20 }
 0x1b3   : > { %s906_s8 = smov (!%p346_p1, %s347_s8), %s353_s9 }
 0x1b4   : > { %356 = sst [smem:[#allocation10 + $0x1]] %s906_s8 }
 0x1b5 PF: > { %p495_p2 = scmp.eq.s32.totalorder %s707_s13, 1  ;;  %s610_s25 = scalar_lea.hbm %s892_s2, 16 }
 0x1b6   : > { %p611_p9 = scmp.ne.s32.totalorder %s892_s2, %s610_s25  ;;  %p616_p5 = scmp.lt.u32.totalorder %s610_s25, %s892_s2 }
 0x1b8   : > { %p612_p13 = pnand %p611_p9, %p495_p2 }
 0x1ba   : > { %p613_p4 = pneg %p612_p13 }
 0x1bc   : > { %p618_p10 = pnand %p616_p5, %p613_p4 }
 0x1be   : > { %621 = shalt.err (!%p618_p10)
}
 0x1bf   : > { %s672_s16 = smov [#allocation10]  }
 0x1c0   : > { %484 = dma.smem_to_hbm (%p495_p2), %s672_s16, 16, %s892_s2, [#allocation7]  }
 0x1c1   : > { %647 = dma.done.wait (%p495_p2), [#allocation7], 16  }
 0x1c2   : > { %649 = vsyncadd (%p495_p2), [#allocation7], 4294967280 }
 0x1c3   : > { %370 = sfence }
 0x1c4 PF: > { %p16_p12 = scmp.ge.s32.totalorder %s710_s14, 4   ;;  %s899_s9 = smov %s656_s10 }
 0x1c5   : > { %s900_s10 = smov %s660_s11  ;;  %s901_s11 = smov %s720_s17 }
 0x1c6   : > { %s902_s12 = smov %s710_s14  ;;  %18 = sbr.rel (!%p16_p12) target bundleno = 6 (0x6), region = 88 }
 0x1cd   :  { %376 = vsyncpa [#allocation6], 1 }
 0x1ce   :  { %378 = vsyncpa [#allocation6 + $0x1], 1 }
 0x1cf   :  { %379 = vsyncpa [#allocation9], 1 }
 0x1d0   :  { %381 = vsyncpa [#allocation9 + $0x1], 1 }
 0x1d1   :  { %382 = vsyncpa [#allocation7], 1 }
 0x1d2   :  { %384 = vsyncpa [#allocation7 + $0x1], 1 }

</bundles_post_ra>
